<compile_context>
chip_gen: v7x
topology: tpu7x:2x2x1
jax: 0.10.0
libtpu: 0.0.40
codegen_flags: <defaults>
</compile_context>

<pallas_src>
import jax
import jax.numpy as jnp
import numpy as np
from jax.experimental import pallas as pl
from jax.experimental.pallas import tpu as pltpu


def _make_fp_kernel(num_layers, idx_bits):
    """Per (batch, N-tile) kernel: 3-NN interpolate + concat(skip) + MLP."""

    keep_mask_val = ~((1 << idx_bits) - 1)   # clears the low index bits

    def kernel(x1_ref, x2_ref, p1_ref, p2_ref, *rest):
        out_ref = rest[-1]
        params = rest[:-1]

        x1 = x1_ref[0]              # (5, TN)   [x;y;z;||p||^2;1], N on lanes
        x2 = x2_ref[0]              # (S, 5)    [-2x;-2y;-2z;1;||p||^2]
        p1 = p1_ref[0]              # (C1, TN)  skip features
        p2 = p2_ref[0]              # (C2, S)   source features
        s = x2.shape[0]
        tn = x1.shape[1]

        # Pairwise squared distances as a single MXU matmul:
        #   dsq[j, i] = ||xyz1_i||^2 + ||xyz2_j||^2 - 2 <xyz1_i, xyz2_j>
        # HIGHEST keeps f32 contract precision so neighbour selection matches
        # the exact per-coordinate formulation.
        dsq = jnp.dot(x2, x1, preferred_element_type=jnp.float32,
                      precision=jax.lax.Precision.HIGHEST)       # (S, TN)
        dsq = jnp.maximum(dsq, 0.0)   # guard cancellation for coincident pts

        # 3-NN selection with a packed value+index key: non-negative f32 bit
        # patterns order like int32, so clearing the low idx_bits mantissa
        # bits (relative perturbation < 2^-(23-idx_bits)) and OR-ing in the
        # source index gives a key whose min yields the min distance, the
        # argmin and a unique one-hot `sel` with ONE cross-sublane reduction
        # per neighbour (instead of two).  Ties resolve to the lowest index.
        iota = jax.lax.broadcasted_iota(jnp.int32, (s, tn), 0)
        keep = jnp.int32(keep_mask_val)
        key = (pltpu.bitcast(dsq, jnp.int32) & keep) | iota
        removed = jnp.int32(jnp.iinfo(jnp.int32).max)   # > any finite key

        wmat = jnp.zeros((s, tn), jnp.float32)
        inv_sum = jnp.zeros((1, tn), jnp.float32)
        for _ in range(3):
            kmin = jnp.min(key, axis=0, keepdims=True)               # (1, TN)
            sel = key == kmin                                        # (S, TN)
            dmin = pltpu.bitcast(kmin & keep, jnp.float32)           # (1, TN)
            inv = pl.reciprocal(jnp.maximum(dmin, 1e-10), approx=True)
            wmat = wmat + sel.astype(jnp.float32) * inv
            inv_sum = inv_sum + inv
            key = jnp.where(sel, removed, key)
        # exact normalizer: one (1,TN) divide, avoids compounding approx error
        wmat = wmat * (jnp.float32(1.0) / inv_sum)

        # interpolate: (C2, S) @ (S, TN) -> (C2, TN) on the MXU
        interp = jnp.dot(p2, wmat, preferred_element_type=jnp.float32)

        # MLP of 1x1 convs + folded (eval-mode) BatchNorm + ReLU.  Layer 0
        # consumes concat([interp, points1]) expressed as a split-K matmul
        # with host-split (BN-folded) weights.
        # TODO(synk): training-mode BatchNorm2d (batch statistics) is not
        # reproduced; BN is folded as an eval-mode affine into weight/bias.
        w0a = params[0][...]        # (O0, C2)  acts on interp
        w0b = params[1][...]        # (O0, C1)  acts on points1
        b0 = params[2][...]         # (O0, 1)
        x = jnp.dot(w0a, interp, preferred_element_type=jnp.float32)
        x = x + jnp.dot(w0b, p1, preferred_element_type=jnp.float32)
        x = jnp.maximum(x + b0, 0.0)
        for l in range(1, num_layers):
            w = params[3 + 2 * (l - 1)][...]
            b = params[4 + 2 * (l - 1)][...]
            x = jnp.maximum(
                jnp.dot(w, x, preferred_element_type=jnp.float32) + b, 0.0)

        out_ref[0] = x.astype(out_ref.dtype)

    return kernel


def pointnet_fp_forward(xyz1, xyz2, points1, points2, weights, scales, biases):
    """weights[l]: (O_l, C_{l-1}); scales/biases[l]: (O_l,) eval-BN fold."""
    B, N, _ = xyz1.shape
    _, S, _ = xyz2.shape
    C1 = points1.shape[1]
    C2 = points2.shape[1]
    L = len(weights)
    O_last = weights[-1].shape[0]
    assert S >= 3, "kernel implements the general 3-NN branch (S >= 3)"
    # TODO(synk): the torch S == 1 fast path (plain feature repeat, no
    # interpolation) is not implemented.
    # TODO(synk): very large S should stream S-chunks through a running top-3
    # (split-K interp) instead of dense (S, TN) temporaries.
    assert S <= 4096, "dense (S, TN) selection path; tile S for larger inputs"

    # Fold eval-mode BN scale into the conv weights (bias already folded by the
    # caller); split the layer-0 weight along K for the split-K matmul.
    fw = [jnp.asarray(sc)[:, None] * jnp.asarray(w) for w, sc in zip(weights, scales)]
    fb = [jnp.asarray(b).reshape(-1, 1) for b in biases]
    w0a, w0b = fw[0][:, :C2], fw[0][:, C2:]
    O0 = fw[0].shape[0]
    o_max = max(w.shape[0] for w in fw)

    # ---- generation-aware N-tile selection -------------------------------
    LANE = 128
    try:
        vmem_cap = int(getattr(pltpu.get_tpu_info(), "vmem_capacity_bytes",
                               64 * 1024 * 1024))
    except Exception:  # defensive fallback: assume the smallest (v7x) VMEM
        vmem_cap = 64 * 1024 * 1024
    s8 = ((S + 7) // 8) * 8

    def per_step_bytes(tn):
        dbl_in = 2 * (5 * tn + s8 * LANE + C1 * tn + C2 * s8)  # double-buffered inputs
        dbl_out = 2 * O_last * tn                              # double-buffered output
        temps = 6 * s8 * tn + (o_max + C2 + C1) * tn           # in-kernel temporaries
        return 4 * (dbl_in + dbl_out + temps)

    budget = max(vmem_cap // 3, 8 * 1024 * 1024)
    n_tile = LANE
    for cand in (2048, 1024, 512, 256, 128):
        if per_step_bytes(cand) <= budget:
            n_tile = cand
            break
    # never exceed the (128-rounded) problem size
    n_tile = min(n_tile, ((N + LANE - 1) // LANE) * LANE)
    # expose >= 2 grid steps so v7x's second TensorCore is used (no-op v5e/v6e)
    while B * (-(-N // n_tile)) < 2 and n_tile > LANE:
        n_tile = max(LANE, ((n_tile // 2 + LANE - 1) // LANE) * LANE)

    # Pad N UP to a multiple of the chosen tile (instead of shrinking the tile
    # until it divides N); padded columns are sliced off at the end.
    Np = (-(-N // n_tile)) * n_tile
    if Np != N:
        xyz1 = jnp.pad(xyz1, ((0, 0), (0, Np - N), (0, 0)))
        points1 = jnp.pad(points1, ((0, 0), (0, 0), (0, Np - N)))

    # Augmented coordinates so dsq is one (S,5)@(5,TN) MXU matmul per tile.
    xyz1_t = jnp.transpose(xyz1, (0, 2, 1))                         # (B, 3, Np)
    n1 = jnp.sum(xyz1_t * xyz1_t, axis=1, keepdims=True)            # (B, 1, Np)
    x1_aug = jnp.concatenate([xyz1_t, n1, jnp.ones_like(n1)], axis=1)        # (B, 5, Np)
    n2 = jnp.sum(xyz2 * xyz2, axis=2, keepdims=True)                # (B, S, 1)
    x2_aug = jnp.concatenate([-2.0 * xyz2, jnp.ones_like(n2), n2], axis=2)   # (B, S, 5)

    grid = (B, Np // n_tile)

    in_specs = [
        pl.BlockSpec((1, 5, n_tile), lambda b, nt: (b, 0, nt)),
        pl.BlockSpec((1, S, 5), lambda b, nt: (b, 0, 0)),
        pl.BlockSpec((1, C1, n_tile), lambda b, nt: (b, 0, nt)),
        pl.BlockSpec((1, C2, S), lambda b, nt: (b, 0, 0)),
    ]
    args = [x1_aug, x2_aug, points1, points2]

    in_specs += [pl.BlockSpec((O0, C2), lambda b, nt: (0, 0)),
                 pl.BlockSpec((O0, C1), lambda b, nt: (0, 0)),
                 pl.BlockSpec((O0, 1), lambda b, nt: (0, 0))]
    args += [w0a, w0b, fb[0]]
    for l in range(1, L):
        O, Cin = fw[l].shape
        in_specs += [pl.BlockSpec((O, Cin), lambda b, nt: (0, 0)),
                     pl.BlockSpec((O, 1), lambda b, nt: (0, 0))]
        args += [fw[l], fb[l]]

    vmem_limit = max(32 * 1024 * 1024,
                     min(2 * per_step_bytes(n_tile), int(vmem_cap * 0.75)))
    idx_bits = max((S - 1).bit_length(), 1)

    out = pl.pallas_call(
        _make_fp_kernel(L, idx_bits),
        out_shape=jax.ShapeDtypeStruct((B, O_last, Np), jnp.float32),
        grid_spec=pltpu.PrefetchScalarGridSpec(
            num_scalar_prefetch=0,
            grid=grid,
            in_specs=in_specs,
            out_specs=pl.BlockSpec((1, O_last, n_tile), lambda b, nt: (b, 0, nt)),
        ),
        compiler_params=pltpu.CompilerParams(
            dimension_semantics=("parallel", "parallel"),
            vmem_limit_bytes=int(vmem_limit),
        ),
    )(*args)
    return out[:, :, :N] if Np != N else out


def reference(xyz1, xyz2, points1, points2, weights, scales, biases):
    """Pure-JAX reference mirroring the torch forward (general S>1 branch)."""
    D = jnp.sum((xyz1[:, :, None, :] - xyz2[:, None, :, :]) ** 2, -1)  # (B,N,S)
    vals, idx = jax.lax.top_k(-D, 3)                                   # 3 smallest
    dist = jnp.maximum(-vals, 1e-10)                                   # (B,N,3)
    norm = jnp.sum(1.0 / dist, -1, keepdims=True)
    weight = (1.0 / dist) / norm                                       # (B,N,3)
    gathered = jnp.take_along_axis(points2[:, :, None, :],             # (B,C2,1,S)
                                   idx[:, None, :, :], axis=3)         # (B,C2,N,3)
    interp = jnp.sum(gathered * weight[:, None, :, :], -1)             # (B,C2,N)
    x = jnp.concatenate([interp, points1], axis=1)
    for w, sc, bi in zip(weights, scales, biases):
        x = jnp.einsum('oc,bcn->bon', w, x)
        x = x * sc[None, :, None] + bi[None, :, None]
        x = jnp.maximum(x, 0.0)
    return x


if __name__ == "__main__":
    B, N, S = 2, 64, 16
    C1, C2 = 8, 8
    mlp = [32, 16]
    in_channel = C1 + C2
    eps = 1e-5

    keys = jax.random.split(jax.random.PRNGKey(0), 16)
    xyz1 = jax.random.normal(keys[0], (B, N, 3), jnp.float32)
    xyz2 = jax.random.normal(keys[1], (B, S, 3), jnp.float32)
    points1 = jax.random.normal(keys[2], (B, C1, N), jnp.float32)
    points2 = jax.random.normal(keys[3], (B, C2, S), jnp.float32)

    # deterministic parameter init: Conv2d(1x1) weight+bias, BatchNorm2d
    # (gamma, beta, running_mean, running_var) folded into per-channel affine.
    weights, scales, biases = [], [], []
    cin = in_channel
    ki = 4
    for out_ch in mlp:
        w = jax.random.normal(keys[ki], (out_ch, cin), jnp.float32) / np.sqrt(cin); ki += 1
        cb = 0.1 * jax.random.normal(keys[ki], (out_ch,), jnp.float32); ki += 1
        gamma = 1.0 + 0.1 * jax.random.normal(keys[ki], (out_ch,), jnp.float32); ki += 1
        beta = 0.1 * jax.random.normal(keys[ki], (out_ch,), jnp.float32); ki += 1
        rmean = 0.05 * jax.random.normal(keys[ki], (out_ch,), jnp.float32); ki += 1
        rvar = 1.0 + 0.1 * jnp.abs(jax.random.normal(keys[ki], (out_ch,), jnp.float32)); ki += 1
        scale = gamma / jnp.sqrt(rvar + eps)
        bias = scale * (cb - rmean) + beta
        weights.append(w); scales.append(scale); biases.append(bias)
        cin = out_ch

    out = pointnet_fp_forward(xyz1, xyz2, points1, points2, weights, scales, biases)
    out = jax.block_until_ready(out)

    ref = reference(xyz1, xyz2, points1, points2, weights, scales, biases)
    assert out.shape == (B, mlp[-1], N), out.shape
    # Tolerance accounts for the EUP approximate per-neighbor reciprocals
    # (~1e-3 relative) used in the inverse-distance weights.
    np.testing.assert_allclose(np.asarray(out), np.asarray(ref), rtol=1e-2, atol=1e-2)
    print("KERNEL_OK")
</pallas_src>

<mosaic_0001>
module attributes {stable_mosaic.version = 11 : i64} {
  func.func @kernel(%arg0: i32, %arg1: i32, %arg2: memref<1x5x128xf32, #tpu.memory_space<vmem>>, %arg3: memref<1x16x5xf32, #tpu.memory_space<vmem>>, %arg4: memref<1x8x128xf32, #tpu.memory_space<vmem>>, %arg5: memref<1x8x16xf32, #tpu.memory_space<vmem>>, %arg6: memref<32x8xf32, #tpu.memory_space<vmem>>, %arg7: memref<32x8xf32, #tpu.memory_space<vmem>>, %arg8: memref<32x1xf32, #tpu.memory_space<vmem>>, %arg9: memref<16x32xf32, #tpu.memory_space<vmem>>, %arg10: memref<16x1xf32, #tpu.memory_space<vmem>>, %arg11: memref<1x16x128xf32, #tpu.memory_space<vmem>>) attributes {dimension_semantics = [#tpu.dimension_semantics<parallel>, #tpu.dimension_semantics<parallel>], iteration_bounds = array<i64: 2, 1>, scalar_prefetch = 0 : i64, scratch_operands = 0 : i64, tpu.core_type = #tpu.core_type<tc>, window_params = [{transform_indices = @transform_0, window_bounds = array<i64: 1, 5, 128>}, {transform_indices = @transform_1, window_bounds = array<i64: 1, 16, 5>}, {transform_indices = @transform_2, window_bounds = array<i64: 1, 8, 128>}, {transform_indices = @transform_3, window_bounds = array<i64: 1, 8, 16>}, {pipeline_mode = #tpu.pipeline_mode<synchronous>, transform_indices = @transform_4, window_bounds = array<i64: 32, 8>}, {pipeline_mode = #tpu.pipeline_mode<synchronous>, transform_indices = @transform_5, window_bounds = array<i64: 32, 8>}, {pipeline_mode = #tpu.pipeline_mode<synchronous>, transform_indices = @transform_6, window_bounds = array<i64: 32, 1>}, {pipeline_mode = #tpu.pipeline_mode<synchronous>, transform_indices = @transform_7, window_bounds = array<i64: 16, 32>}, {pipeline_mode = #tpu.pipeline_mode<synchronous>, transform_indices = @transform_8, window_bounds = array<i64: 16, 1>}, {transform_indices = @transform_9, window_bounds = array<i64: 1, 16, 128>}]} {
    %c0 = arith.constant 0 : index
    %c0_0 = arith.constant 0 : index
    %c0_1 = arith.constant 0 : index
    %0 = vector.load %arg2[%c0, %c0_0, %c0_1] : memref<1x5x128xf32, #tpu.memory_space<vmem>>, vector<1x5x128xf32>
    %1 = vector.shape_cast %0 : vector<1x5x128xf32> to vector<5x128xf32>
    %c0_2 = arith.constant 0 : index
    %c0_3 = arith.constant 0 : index
    %c0_4 = arith.constant 0 : index
    %2 = vector.load %arg3[%c0_2, %c0_3, %c0_4] : memref<1x16x5xf32, #tpu.memory_space<vmem>>, vector<1x16x5xf32>
    %3 = vector.shape_cast %2 : vector<1x16x5xf32> to vector<16x5xf32>
    %c0_5 = arith.constant 0 : index
    %c0_6 = arith.constant 0 : index
    %c0_7 = arith.constant 0 : index
    %4 = vector.load %arg4[%c0_5, %c0_6, %c0_7] : memref<1x8x128xf32, #tpu.memory_space<vmem>>, vector<1x8x128xf32>
    %5 = vector.shape_cast %4 : vector<1x8x128xf32> to vector<8x128xf32>
    %c0_8 = arith.constant 0 : index
    %c0_9 = arith.constant 0 : index
    %c0_10 = arith.constant 0 : index
    %6 = vector.load %arg5[%c0_8, %c0_9, %c0_10] : memref<1x8x16xf32, #tpu.memory_space<vmem>>, vector<1x8x16xf32>
    %7 = vector.shape_cast %6 : vector<1x8x16xf32> to vector<8x16xf32>
    %cst = arith.constant dense<0.000000e+00> : vector<16x128xf32>
    %8 = tpu.matmul %3, %1, %cst {dimension_numbers = #tpu.dot_dimension_numbers<[1], [0], [0], [1], [0, 0, 1, 1], [], []>, precision = #tpu.contract_precision<fp32>} : vector<16x5xf32>, vector<5x128xf32>, vector<16x128xf32> -> vector<16x128xf32>
    %cst_11 = arith.constant 0.000000e+00 : f32
    %9 = vector.broadcast %cst_11 : f32 to vector<16x128xf32>
    %10 = arith.maximumf %8, %9 : vector<16x128xf32>
    %11 = tpu.iota {dimensions = array<i32: 0>} : vector<16x128xi32>
    %12 = tpu.bitcast %10 : vector<16x128xf32> -> vector<16x128xi32>
    %c-16_i32 = arith.constant -16 : i32
    %13 = vector.broadcast %c-16_i32 : i32 to vector<16x128xi32>
    %14 = arith.andi %12, %13 : vector<16x128xi32>
    %15 = arith.ori %14, %11 : vector<16x128xi32>
    %cst_12 = arith.constant 0.000000e+00 : f32
    %16 = vector.broadcast %cst_12 : f32 to vector<16x128xf32>
    %cst_13 = arith.constant 0.000000e+00 : f32
    %17 = vector.broadcast %cst_13 : f32 to vector<1x128xf32>
    %cst_14 = arith.constant dense<2147483647> : vector<128xi32>
    %18 = vector.multi_reduction <minsi>, %15, %cst_14 [0] : vector<16x128xi32> to vector<128xi32>
    %19 = vector.shape_cast %18 : vector<128xi32> to vector<1x128xi32>
    %20 = vector.broadcast %19 : vector<1x128xi32> to vector<16x128xi32>
    %21 = arith.cmpi eq, %15, %20 : vector<16x128xi32>
    %c-16_i32_15 = arith.constant -16 : i32
    %22 = vector.broadcast %c-16_i32_15 : i32 to vector<1x128xi32>
    %23 = arith.andi %19, %22 : vector<1x128xi32>
    %24 = tpu.bitcast %23 : vector<1x128xi32> -> vector<1x128xf32>
    %cst_16 = arith.constant 1.000000e-10 : f32
    %25 = vector.broadcast %cst_16 : f32 to vector<1x128xf32>
    %26 = arith.maximumf %24, %25 : vector<1x128xf32>
    %27 = tpu.reciprocal %26 {approx = true} : vector<1x128xf32> -> vector<1x128xf32>
    %28 = arith.extui %21 : vector<16x128xi1> to vector<16x128xi32>
    %29 = arith.sitofp %28 : vector<16x128xi32> to vector<16x128xf32>
    %30 = vector.broadcast %27 : vector<1x128xf32> to vector<16x128xf32>
    %31 = arith.mulf %29, %30 : vector<16x128xf32>
    %32 = arith.addf %16, %31 : vector<16x128xf32>
    %33 = arith.addf %17, %27 : vector<1x128xf32>
    %c2147483647_i32 = arith.constant 2147483647 : i32
    %34 = vector.broadcast %c2147483647_i32 : i32 to vector<16x128xi32>
    %35 = arith.select %21, %34, %15 : vector<16x128xi1>, vector<16x128xi32>
    %cst_17 = arith.constant dense<2147483647> : vector<128xi32>
    %36 = vector.multi_reduction <minsi>, %35, %cst_17 [0] : vector<16x128xi32> to vector<128xi32>
    %37 = vector.shape_cast %36 : vector<128xi32> to vector<1x128xi32>
    %38 = vector.broadcast %37 : vector<1x128xi32> to vector<16x128xi32>
    %39 = arith.cmpi eq, %35, %38 : vector<16x128xi32>
    %c-16_i32_18 = arith.constant -16 : i32
    %40 = vector.broadcast %c-16_i32_18 : i32 to vector<1x128xi32>
    %41 = arith.andi %37, %40 : vector<1x128xi32>
    %42 = tpu.bitcast %41 : vector<1x128xi32> -> vector<1x128xf32>
    %cst_19 = arith.constant 1.000000e-10 : f32
    %43 = vector.broadcast %cst_19 : f32 to vector<1x128xf32>
    %44 = arith.maximumf %42, %43 : vector<1x128xf32>
    %45 = tpu.reciprocal %44 {approx = true} : vector<1x128xf32> -> vector<1x128xf32>
    %46 = arith.extui %39 : vector<16x128xi1> to vector<16x128xi32>
    %47 = arith.sitofp %46 : vector<16x128xi32> to vector<16x128xf32>
    %48 = vector.broadcast %45 : vector<1x128xf32> to vector<16x128xf32>
    %49 = arith.mulf %47, %48 : vector<16x128xf32>
    %50 = arith.addf %32, %49 : vector<16x128xf32>
    %51 = arith.addf %33, %45 : vector<1x128xf32>
    %c2147483647_i32_20 = arith.constant 2147483647 : i32
    %52 = vector.broadcast %c2147483647_i32_20 : i32 to vector<16x128xi32>
    %53 = arith.select %39, %52, %35 : vector<16x128xi1>, vector<16x128xi32>
    %cst_21 = arith.constant dense<2147483647> : vector<128xi32>
    %54 = vector.multi_reduction <minsi>, %53, %cst_21 [0] : vector<16x128xi32> to vector<128xi32>
    %55 = vector.shape_cast %54 : vector<128xi32> to vector<1x128xi32>
    %56 = vector.broadcast %55 : vector<1x128xi32> to vector<16x128xi32>
    %57 = arith.cmpi eq, %53, %56 : vector<16x128xi32>
    %c-16_i32_22 = arith.constant -16 : i32
    %58 = vector.broadcast %c-16_i32_22 : i32 to vector<1x128xi32>
    %59 = arith.andi %55, %58 : vector<1x128xi32>
    %60 = tpu.bitcast %59 : vector<1x128xi32> -> vector<1x128xf32>
    %cst_23 = arith.constant 1.000000e-10 : f32
    %61 = vector.broadcast %cst_23 : f32 to vector<1x128xf32>
    %62 = arith.maximumf %60, %61 : vector<1x128xf32>
    %63 = tpu.reciprocal %62 {approx = true} : vector<1x128xf32> -> vector<1x128xf32>
    %64 = arith.extui %57 : vector<16x128xi1> to vector<16x128xi32>
    %65 = arith.sitofp %64 : vector<16x128xi32> to vector<16x128xf32>
    %66 = vector.broadcast %63 : vector<1x128xf32> to vector<16x128xf32>
    %67 = arith.mulf %65, %66 : vector<16x128xf32>
    %68 = arith.addf %50, %67 : vector<16x128xf32>
    %69 = arith.addf %51, %63 : vector<1x128xf32>
    %cst_24 = arith.constant 1.000000e+00 : f32
    %70 = vector.broadcast %cst_24 : f32 to vector<1x128xf32>
    %71 = arith.divf %70, %69 : vector<1x128xf32>
    %72 = vector.broadcast %71 : vector<1x128xf32> to vector<16x128xf32>
    %73 = arith.mulf %68, %72 : vector<16x128xf32>
    %cst_25 = arith.constant dense<0.000000e+00> : vector<8x128xf32>
    %74 = tpu.matmul %7, %73, %cst_25 {dimension_numbers = #tpu.dot_dimension_numbers<[1], [0], [0], [1], [0, 0, 1, 1], [], []>} : vector<8x16xf32>, vector<16x128xf32>, vector<8x128xf32> -> vector<8x128xf32>
    %c0_26 = arith.constant 0 : index
    %c0_27 = arith.constant 0 : index
    %75 = vector.load %arg6[%c0_26, %c0_27] : memref<32x8xf32, #tpu.memory_space<vmem>>, vector<32x8xf32>
    %c0_28 = arith.constant 0 : index
    %c0_29 = arith.constant 0 : index
    %76 = vector.load %arg7[%c0_28, %c0_29] : memref<32x8xf32, #tpu.memory_space<vmem>>, vector<32x8xf32>
    %c0_30 = arith.constant 0 : index
    %c0_31 = arith.constant 0 : index
    %77 = vector.load %arg8[%c0_30, %c0_31] : memref<32x1xf32, #tpu.memory_space<vmem>>, vector<32x1xf32>
    %cst_32 = arith.constant dense<0.000000e+00> : vector<32x128xf32>
    %78 = tpu.matmul %75, %74, %cst_32 {dimension_numbers = #tpu.dot_dimension_numbers<[1], [0], [0], [1], [0, 0, 1, 1], [], []>} : vector<32x8xf32>, vector<8x128xf32>, vector<32x128xf32> -> vector<32x128xf32>
    %cst_33 = arith.constant dense<0.000000e+00> : vector<32x128xf32>
    %79 = tpu.matmul %76, %5, %cst_33 {dimension_numbers = #tpu.dot_dimension_numbers<[1], [0], [0], [1], [0, 0, 1, 1], [], []>} : vector<32x8xf32>, vector<8x128xf32>, vector<32x128xf32> -> vector<32x128xf32>
    %80 = arith.addf %78, %79 : vector<32x128xf32>
    %81 = vector.broadcast %77 : vector<32x1xf32> to vector<32x128xf32>
    %82 = arith.addf %80, %81 : vector<32x128xf32>
    %cst_34 = arith.constant 0.000000e+00 : f32
    %83 = vector.broadcast %cst_34 : f32 to vector<32x128xf32>
    %84 = arith.maximumf %82, %83 : vector<32x128xf32>
    %c0_35 = arith.constant 0 : index
    %c0_36 = arith.constant 0 : index
    %85 = vector.load %arg9[%c0_35, %c0_36] : memref<16x32xf32, #tpu.memory_space<vmem>>, vector<16x32xf32>
    %c0_37 = arith.constant 0 : index
    %c0_38 = arith.constant 0 : index
    %86 = vector.load %arg10[%c0_37, %c0_38] : memref<16x1xf32, #tpu.memory_space<vmem>>, vector<16x1xf32>
    %cst_39 = arith.constant dense<0.000000e+00> : vector<16x128xf32>
    %87 = tpu.matmul %85, %84, %cst_39 {dimension_numbers = #tpu.dot_dimension_numbers<[1], [0], [0], [1], [0, 0, 1, 1], [], []>} : vector<16x32xf32>, vector<32x128xf32>, vector<16x128xf32> -> vector<16x128xf32>
    %88 = vector.broadcast %86 : vector<16x1xf32> to vector<16x128xf32>
    %89 = arith.addf %87, %88 : vector<16x128xf32>
    %cst_40 = arith.constant 0.000000e+00 : f32
    %90 = vector.broadcast %cst_40 : f32 to vector<16x128xf32>
    %91 = arith.maximumf %89, %90 : vector<16x128xf32>
    %c0_41 = arith.constant 0 : index
    %c0_42 = arith.constant 0 : index
    %c0_43 = arith.constant 0 : index
    %92 = vector.load %arg11[%c0_41, %c0_42, %c0_43] : memref<1x16x128xf32, #tpu.memory_space<vmem>>, vector<1x16x128xf32>
    %93 = vector.shape_cast %92 : vector<1x16x128xf32> to vector<16x128xf32>
    %94 = vector.shape_cast %91 : vector<16x128xf32> to vector<1x16x128xf32>
    tpu.vector_store %arg11[%c0_41, %c0_42, %c0_43], %94 {strides = array<i32>} : memref<1x16x128xf32, #tpu.memory_space<vmem>>, vector<1x16x128xf32>,
    return
  }
  func.func @transform_0(%arg0: i32, %arg1: i32) -> (i32, i32, i32) {
    %c0_i32 = arith.constant 0 : i32
    %c0_i32_0 = arith.constant 0 : i32
    return %arg0, %c0_i32, %arg1 : i32, i32, i32
  }
  func.func @transform_1(%arg0: i32, %arg1: i32) -> (i32, i32, i32) {
    %c0_i32 = arith.constant 0 : i32
    %c0_i32_0 = arith.constant 0 : i32
    %c0_i32_1 = arith.constant 0 : i32
    return %arg0, %c0_i32, %c0_i32_0 : i32, i32, i32
  }
  func.func @transform_2(%arg0: i32, %arg1: i32) -> (i32, i32, i32) {
    %c0_i32 = arith.constant 0 : i32
    %c0_i32_0 = arith.constant 0 : i32
    return %arg0, %c0_i32, %arg1 : i32, i32, i32
  }
  func.func @transform_3(%arg0: i32, %arg1: i32) -> (i32, i32, i32) {
    %c0_i32 = arith.constant 0 : i32
    %c0_i32_0 = arith.constant 0 : i32
    %c0_i32_1 = arith.constant 0 : i32
    return %arg0, %c0_i32, %c0_i32_0 : i32, i32, i32
  }
  func.func @transform_4(%arg0: i32, %arg1: i32) -> (i32, i32) {
    %c0_i32 = arith.constant 0 : i32
    %c0_i32_0 = arith.constant 0 : i32
    %c0_i32_1 = arith.constant 0 : i32
    return %c0_i32, %c0_i32_0 : i32, i32
  }
  func.func @transform_5(%arg0: i32, %arg1: i32) -> (i32, i32) {
    %c0_i32 = arith.constant 0 : i32
    %c0_i32_0 = arith.constant 0 : i32
    %c0_i32_1 = arith.constant 0 : i32
    return %c0_i32, %c0_i32_0 : i32, i32
  }
  func.func @transform_6(%arg0: i32, %arg1: i32) -> (i32, i32) {
    %c0_i32 = arith.constant 0 : i32
    %c0_i32_0 = arith.constant 0 : i32
    %c0_i32_1 = arith.constant 0 : i32
    return %c0_i32, %c0_i32_0 : i32, i32
  }
  func.func @transform_7(%arg0: i32, %arg1: i32) -> (i32, i32) {
    %c0_i32 = arith.constant 0 : i32
    %c0_i32_0 = arith.constant 0 : i32
    %c0_i32_1 = arith.constant 0 : i32
    return %c0_i32, %c0_i32_0 : i32, i32
  }
  func.func @transform_8(%arg0: i32, %arg1: i32) -> (i32, i32) {
    %c0_i32 = arith.constant 0 : i32
    %c0_i32_0 = arith.constant 0 : i32
    %c0_i32_1 = arith.constant 0 : i32
    return %c0_i32, %c0_i32_0 : i32, i32
  }
  func.func @transform_9(%arg0: i32, %arg1: i32) -> (i32, i32, i32) {
    %c0_i32 = arith.constant 0 : i32
    %c0_i32_0 = arith.constant 0 : i32
    return %arg0, %c0_i32, %arg1 : i32, i32, i32
  }
}

</mosaic_0001>

<bundles_post_ra>
// kernel: tpu_custom_call.1
= control target key start
LH: loop header
LB: loop body
LE: loop exit
PB: predicated region body
PF: predicated region fallthrough
CT: control target
= control target key end

     0   :  { %14 = vsyncpa [#allocation3], 0  ;;  %s2129_s0 = inlined_call_operand.vmem [shape: f32[2,5,128], index: 0, kind: input, shape index: {}]   ;;  %s2130_s1 = inlined_call_operand.vmem [shape: f32[2,16,5], index: 1, kind: input, shape index: {}]   ;;  %s2131_s2 = inlined_call_operand.vmem [shape: f32[2,8,128], index: 2, kind: input, shape index: {}]   ;;  %s2132_s3 = inlined_call_operand.vmem [shape: f32[2,8,16], index: 3, kind: input, shape index: {}]   ;;  %s2133_s4 = inlined_call_operand.vmem [shape: f32[32,8], index: 4, kind: input, shape index: {}]   ;;  %s2134_s5 = inlined_call_operand.vmem [shape: f32[32,8], index: 5, kind: input, shape index: {}]   ;;  %s2135_s6 = inlined_call_operand.vmem [shape: f32[32,1], index: 6, kind: input, shape index: {}]   ;;  %s2136_s7 = inlined_call_operand.vmem [shape: f32[16,32], index: 7, kind: input, shape index: {}]   ;;  %s2137_s8 = inlined_call_operand.vmem [shape: f32[16,1], index: 8, kind: input, shape index: {}]   ;;  %s2138_s9 = inlined_call_operand.hbm [shape: f32[2,16,128], index: 9, kind: output, shape index: {}]  }
   0x1   :  { %16 = vsyncpa [#allocation3 + $0x1], 0  ;;  %s1927_s30 = smov 0   ;;  %s1929_s10 = smov 0  }
   0x2   :  { %s1931_s11 = smov 0   ;;  %s1933_s12 = smov 0  }
   0x3   :  { %s1935_s13 = smov 0   ;;  %s1937_s14 = smov 0  }
   0x4 LB: > { %s1558_s15 = sadd.s32 4294967295, %s1868_s14   ;;  %s1559_s16 = sadd.s32 4294967294, %s1868_s14   ;;  %s1868_s14 = sphi %s1937_s14, %s22_s14   ;;  %s1864_s13 = sphi %s1935_s13, %s2145_s13   ;;  %s1860_s12 = sphi %s1933_s12, %s2144_s12   ;;  %s1856_s11 = sphi %s1931_s11, %s2143_s11   ;;  %s1852_s10 = sphi %s1929_s10, %s2142_s10   ;;  %s1848_s30 = sphi %s1927_s30, %s2141_s30  }
   0x5   : > { %s34_s17 = sadd.s32 1, %s1864_s13  ;;  %s256_s18 = sadd.s32 1, %s1856_s11 }
   0x6   : > { %p36_p0 = scmp.ge.s32.totalorder %s34_s17, 2  ;;  %p266_p1 = scmp.ne.s32.totalorder %s1856_s11, %s1852_s10 }
   0x7   : > { %p267_p2 = scmp.eq.s32.totalorder %s1558_s15, 1  ;;  %p272_p3 = scmp.ne.s32.totalorder %s1852_s10, %s1848_s30 }
   0x8   : > { %s2147_s17 = smov (%p36_p0, %s34_s17), 0  ;;  %p273_p5 = scmp.eq.s32.totalorder %s1559_s16, 1 }
   0x9   : > { %p1967_p4 = por %p267_p2, %p266_p1  ;;  %s251_s20 = ssub.s32 %s1864_s13, %s2147_s17 }
   0xa   : > { %p1562_p6 = scmp.ge.s32.totalorder %s1868_s14, 1  ;;  %p254_p7 = scmp.eq.s32.totalorder %s251_s20, 0 }
   0xb   : > { %p1974_p8 = por %p273_p5, %p272_p3  ;;  %p341_p9 = scmp.lt.s32.totalorder %s1868_s14, 3 }
   0xc   : > { %s1980_s22 = scalar_select %p254_p7, %s1856_s11, %s256_s18  }
   0xd   : > { %p342_p10 = pnand %p1562_p6, %p341_p9 }
   0xe   : > { %p395_p11 = scmp.lt.s32.totalorder (!%p342_p10), %s1860_s12, 1  ;;  %vm430_vm0 = vcmask (!%p342_p10), 1044480   ;;  %vm423_vm1 = vcmask (!%p342_p10), 39936   ;;  %v1870_v21 = vmov (!%p342_p10), 0.0|0.0   ;;  %vm1871_vm2 = vmmov (!%p342_p10), 0  }
   0xf   : > { %345 = sbr.rel (%p342_p10) target bundleno = 1053 (0x41d), region = 56  ;;  %1694 = vmatprep.subr.bf16.mxu1 (!%p342_p10), %v1870_v21  ;;  %v1872_v22 = vmov (!%p342_p10), 0.0   ;;  %v925_v23 = vlaneseq (!%p342_p10) }
  0x10   : > { %1664 = vmatprep.mubr.msk.f32.mxu1 (!%p342_p10), %vm1871_vm2, %v1872_v22 }
  0x11   : > { %v926_v24 = vshrl.u32 (!%p342_p10), %v925_v23, 7 }
  0x13   : > { %v927_v27 = vadd.s32 (!%p342_p10), 8, %v926_v24 }
  0x16   : > { %s396_s23 = scalar_select %p395_p11, %s1860_s12, 1 }
  0x18   : > { %s1984_s24 = sshll.u32 %s396_s23, 3  ;;  %s1591_s25 = sshll.u32 %s396_s23, 4 }
  0x19   : > { %s401_s28 = scalar_lea.vmem %s2129_s0, %s1984_s24  ;;  %s406_s16 = scalar_lea.vmem %s2130_s1, %s1591_s25 }
  0x1a   : > { %v418_v0 = vld [vmem:[%s401_s28] sm:$0x1f]  ;;  %v420_v2 = vld [vmem:[%s406_s16 + $0x8] sm:$0xff]  ;;  %s413_s23 = scalar_lea.vmem %s2131_s2, %s1984_s24  ;;  %s417_s27 = scalar_lea.vmem %s2132_s3, %s1984_s24 }
  0x1b   : > { %v419_v1 = vld [vmem:[%s406_s16] sm:$0xff]  ;;  %v432_v3 = vsel %vm430_vm0, %v418_v0, 0  ;;  %v428_v5 = vsel %vm423_vm1, %v420_v2, 0  ;;  %s1592_s16 = sshll.u32 %s1860_s12, 8  ;;  %s1874_s25 = smov [#allocation2]  }
  0x1c   : > { %v425_v4 = vsel %vm423_vm1, %v419_v1, 0  ;;  %v435_v6 = vand.u32 4294901760, %v432_v3  ;;  %v510_v8 = vand.u32 4294901760, %v428_v5  ;;  %s2081_s20 = scalar_lea.hbm %s2138_s9, %s1592_s16  ;;  %s1794_s26 = sshll.u32 %s1874_s25, 4  ;;  %s1795_s26 = int_to_ptr.vmem [resolvable:$false] %s1794_s26 }
  0x1d   : > { %v500_v7 = vand.u32 4294901760, %v425_v4 }
  0x1e   : > { %1630 = vmatprep.subr.mxu0 %v435_v6  ;;  %v511_v10 = vsub.f32 %v428_v5, %v510_v8  ;;  %v522_v11 = vsub.f32 %v432_v3, %v435_v6 }
  0x1f   : > { %v501_v9 = vsub.f32 %v425_v4, %v500_v7  ;;  %1631 = vmatpush3.msra.mxu0 %v435_v6 }
  0x20   : > { %v512_v13 = vand.u32 4294901760, %v511_v10  ;;  %v523_v14 = vand.u32 4294901760, %v522_v11 }
  0x21   : > { %v502_v12 = vand.u32 4294901760, %v501_v9 }
  0x22   : > { %v513_v16 = vsub.f32 %v511_v10, %v512_v13  ;;  %v524_v17 = vsub.f32 %v522_v11, %v523_v14 }
  0x23   : > { %v503_v15 = vsub.f32 %v501_v9, %v502_v12 }
  0x24   : > { %v514_v19 = vand.u32 4294901760, %v513_v16  ;;  %v525_v20 = vand.u32 4294901760, %v524_v17 }
  0x25   : > { %v504_v18 = vand.u32 4294901760, %v503_v15 }
  0x26   : > { %1635 = vmatprep.subr.mxu0 %v525_v20 }
  0x27   : > { %1632 = vmatprep.mubr.f32.mxu0 %v504_v18 }
  0x28   : > { %1633 = vmatmul.mubr.f32.vlgmr.msra.gmra.mrb[0].mxu0 %v514_v19 }
  0x29   : > { %1636 = vmatpush3.msra.mxu0 %v525_v20  ;;  %1637 = vmatprep.mubr.f32.mxu0 %v500_v7 }
  0x2a   : > { %1640 = vmatprep.subr.mxu0 %v522_v11 }
  0x30   : > { %1638 = vmatmul.mubr.f32.vlgmr.msra.gmra.mrb[0].mxu0 %v510_v8 }
  0x31   : > { %1641 = vmatpush3.msra.mxu0 %v522_v11  ;;  %1642 = vmatprep.mubr.f32.mxu0 %v501_v9 }
  0x32   : > { %1645 = vmatprep.subr.mxu0 %v435_v6 }
  0x38   : > { %1643 = vmatmul.mubr.f32.vlgmr.msra.gmra.mrb[0].mxu0 %v511_v10 }
  0x39   : > { %1646 = vmatpush3.msra.mxu0 %v435_v6  ;;  %1647 = vmatprep.mubr.f32.mxu0 %v502_v12 }
  0x3a   : > { %1650 = vmatprep.subr.mxu0 %v523_v14 }
  0x40   : > { %1648 = vmatmul.mubr.f32.vlgmr.msra.gmra.mrb[0].mxu0 %v512_v13 }
  0x41   : > { %1651 = vmatpush3.msra.mxu0 %v523_v14  ;;  %1652 = vmatprep.mubr.f32.mxu0 %v500_v7 }
  0x42   : > { %1655 = vmatprep.subr.mxu0 %v435_v6 }
  0x48   : > { %1653 = vmatmul.mubr.f32.vlgmr.msra.gmra.mrb[0].mxu0 %v510_v8 }
  0x49   : > { %1656 = vmatpush3.msra.mxu0 %v435_v6  ;;  %1657 = vmatprep.mubr.f32.mxu0 %v500_v7 }
  0x50   : > { %1658 = vmatmul.mubr.f32.vlgmr.msra.gmra.mrb[0].mxu0 %v510_v8 }
 0x123   : > { %v1659_v25 = vpop.f32.mrb[0].mxu0 }
 0x124   : > { %v924_v26 = vmax.f32 %v1659_v25, 0.0  ;;  %v913_v28 = vpop.f32.mrb[1].mxu0 }
 0x125   : > { %v923_v29 = vmax.f32 %v913_v28, 0.0  ;;  %v1098_v28 = vld [vmem:[%s2134_s5] sm:$0xff] }
 0x126   : > { %v931_v30 = vand.u32 4294967280, %v924_v26 }
 0x127   : > { %v930_v31 = vand.u32 4294967280, %v923_v29  ;;  %v1099_v29 = vld [vmem:[%s2134_s5 + $0x8] sm:$0xff] }
 0x128   : > { %v933_v32 = vor.u32 %v931_v30, %v927_v27  ;;  %v421_v27 = vld [vmem:[%s413_s23] sm:$0xff]  ;;  %v1100_v30 = vld [vmem:[%s2134_s5 + $0x10] sm:$0xff] }
 0x129   : > { %v932_v33 = vor.u32 %v930_v31, %v926_v24  ;;  %v1101_v31 = vld [vmem:[%s2134_s5 + $0x18] sm:$0xff] }
 0x12b   : > { %vm934_vm3 = vcmp.lt.s32.totalorder %v932_v33, %v933_v32 }
 0x12c   : > { %v935_v34 = vsel %vm934_vm3, %v932_v33, %v933_v32 }
 0x12d   : > { %v936_v35 = vrot.slane %v935_v34, 4 }
 0x12f   : > { %vm937_vm4 = vcmp.lt.s32.totalorder %v935_v34, %v936_v35 }
 0x130   : > { %v938_v36 = vsel %vm937_vm4, %v935_v34, %v936_v35  ;;  %v1104_v34 = vld [vmem:[%s2135_s6 + $0x10] sm:$0xff]  ;;  %v1873_v35 = vmov 0  }
 0x131   : > { %v939_v37 = vrot.slane %v938_v36, 2  ;;  %1780 = vset.pattern.permute.xlu0 %v1873_v35  ;;  %1781 = vset.pattern.permute.xlu1 %v1873_v35 }
 0x132   : > { %1313 = vperm.xlu1 %1781, %v1104_v34  }
 0x133   : > { %vm940_vm5 = vcmp.lt.s32.totalorder %v938_v36, %v939_v37 }
 0x134   : > { %v941_v38 = vsel %vm940_vm5, %v938_v36, %v939_v37  ;;  %vm1020_vm5 = vcmask 130048   ;;  %v1103_v36 = vld [vmem:[%s2135_s6 + $0x8] sm:$0xff]  ;;  %v1105_v37 = vld [vmem:[%s2135_s6 + $0x18] sm:$0xff] }
 0x135   : > { %v942_v39 = vrot.slane %v941_v38, 1 }
 0x136   : > { %1318 = vperm.xlu1 %1781, %v1105_v37  }
 0x137   : > { %vm943_vm6 = vcmp.lt.s32.totalorder %v941_v38, %v942_v39 }
 0x138   : > { %v944_v40 = vsel %vm943_vm6, %v941_v38, %v942_v39  ;;  %vm1106_vm6 = vcmask 64512   ;;  %v1331_v38 = vld [vmem:[%s2137_s8] sm:$0xff]  ;;  %v1332_v39 = vld [vmem:[%s2137_s8 + $0x8] sm:$0xff] }
 0x139   : > { %vm945_vm7 = vcmp.eq.s32.totalorder %v932_v33, %v944_v40  ;;  %v947_v41 = vand.u32 4294967280, %v944_v40  ;;  %vm946_vm8 = vcmp.eq.s32.totalorder %v933_v32, %v944_v40 }
 0x13a   : > { %v960_v42 = vsel %vm945_vm7, 2147483647, %v932_v33  ;;  %v961_v43 = vsel %vm946_vm8, 2147483647, %v933_v32  ;;  %v1569_v52 = vsel %vm945_vm7, 1.0, %v1872_v22  ;;  %v1570_v53 = vsel %vm946_vm8, 1.0, %v1872_v22  ;;  %1340 = vperm.xlu1 %1781, %v1332_v39  }
 0x13b   : > { %v949_v44 = vmax.f32 %v947_v41, 1e-10  ;;  %vm962_vm9 = vcmp.lt.s32.totalorder %v960_v42, %v961_v43  ;;  %v1094_v32 = vld [vmem:[%s2133_s4] sm:$0xff]  ;;  %v1095_v41 = vld [vmem:[%s2133_s4 + $0x8] sm:$0xff]  ;;  %vm1343_vm7 = vcmask 261120  }
 0x13c   : > { %v963_v45 = vsel %vm962_vm9, %v960_v42, %v961_v43  ;;  %v1102_v33 = vld [vmem:[%s2135_s6] sm:$0xff] }
 0x13d   : > { %1782 = vrcp.f32 %v949_v44  ;;  %v964_v46 = vrot.slane %v963_v45, 4  ;;  %1303 = vperm.xlu0 %1780, %v1102_v33   ;;  %v1097_v44 = vld [vmem:[%s2133_s4 + $0x18] sm:$0xff] }
 0x13f   : > { %vm965_vm10 = vcmp.lt.s32.totalorder %v963_v45, %v964_v46 }
 0x140   : > { %v966_v47 = vsel %vm965_vm10, %v963_v45, %v964_v46  ;;  %v1329_v45 = vld [vmem:[%s2136_s7] sm:$0xff] }
 0x141   : > { %v967_v48 = vrot.slane %v966_v47, 2  ;;  %1308 = vperm.xlu0 %1780, %v1103_v36  }
 0x143   : > { %vm968_vm11 = vcmp.lt.s32.totalorder %v966_v47, %v967_v48 }
 0x144   : > { %v969_v49 = vsel %vm968_vm11, %v966_v47, %v967_v48 }
 0x145   : > { %v970_v50 = vrot.slane %v969_v49, 1  ;;  %1335 = vperm.xlu0 %1780, %v1331_v38  }
 0x147   : > { %v1783_v51 = vpop.eup %1782  ;;  %vm971_vm12 = vcmp.lt.s32.totalorder %v969_v49, %v970_v50 }
 0x148   : > { %v955_v54 = vmul.f32 %v1783_v51, %v1569_v52  ;;  %v956_v55 = vmul.f32 %v1783_v51, %v1570_v53  ;;  %v972_v56 = vsel %vm971_vm12, %v969_v49, %v970_v50 }
 0x149   : > { %vm973_vm13 = vcmp.eq.s32.totalorder %v960_v42, %v972_v56  ;;  %vm974_vm14 = vcmp.eq.s32.totalorder %v961_v43, %v972_v56  ;;  %v975_v57 = vand.u32 4294967280, %v972_v56 }
 0x14a   : > { %v988_v58 = vsel %vm973_vm13, 2147483647, %v960_v42  ;;  %v989_v59 = vsel %vm974_vm14, 2147483647, %v961_v43  ;;  %v1571_v4 = vsel %vm973_vm13, 1.0, %v1872_v22  ;;  %v1572_v5 = vsel %vm974_vm14, 1.0, %v1872_v22 }
 0x14b   : > { %v977_v60 = vmax.f32 %v975_v57, 1e-10  ;;  %vm990_vm15 = vcmp.lt.s32.totalorder %v988_v58, %v989_v59  ;;  %v1096_v43 = vld [vmem:[%s2133_s4 + $0x10] sm:$0xff] }
 0x14c   : > { %v991_v61 = vsel %vm990_vm15, %v988_v58, %v989_v59 }
 0x14d   : > { %1784 = vrcp.f32 %v977_v60  ;;  %v992_v62 = vrot.slane %v991_v61, 4 }
 0x14f   : > { %vm993_vm0 = vcmp.lt.s32.totalorder %v991_v61, %v992_v62 }
 0x150   : > { %v994_v63 = vsel %vm993_vm0, %v991_v61, %v992_v62 }
 0x151   : > { %v995_v0 = vrot.slane %v994_v63, 2 }
 0x153   : > { %vm996_vm1 = vcmp.lt.s32.totalorder %v994_v63, %v995_v0 }
 0x154   : > { %v997_v1 = vsel %vm996_vm1, %v994_v63, %v995_v0  ;;  %v1330_v0 = vld [vmem:[%s2136_s7 + $0x8] sm:$0xff] }
 0x155   : > { %v998_v2 = vrot.slane %v997_v1, 1 }
 0x157   : > { %v1785_v3 = vpop.eup %1784  ;;  %vm999_vm2 = vcmp.lt.s32.totalorder %v997_v1, %v998_v2 }
 0x158   : > { %v983_v6 = vmul.f32 %v1785_v3, %v1571_v4  ;;  %v984_v7 = vmul.f32 %v1785_v3, %v1572_v5  ;;  %v987_v8 = vadd.f32 %v1785_v3, %v1783_v51  ;;  %v1000_v9 = vsel %vm999_vm2, %v997_v1, %v998_v2 }
 0x159   : > { %vm1001_vm3 = vcmp.eq.s32.totalorder %v988_v58, %v1000_v9  ;;  %vm1002_vm4 = vcmp.eq.s32.totalorder %v989_v59, %v1000_v9  ;;  %v1003_v10 = vand.u32 4294967280, %v1000_v9 }
 0x15a   : > { %v985_v11 = vadd.f32 %v983_v6, %v955_v54  ;;  %v986_v12 = vadd.f32 %v984_v7, %v956_v55  ;;  %v1573_v15 = vsel %vm1001_vm3, 1.0, %v1872_v22  ;;  %v1574_v16 = vsel %vm1002_vm4, 1.0, %v1872_v22  ;;  %v422_v22 = vld [vmem:[%s417_s27] sm:$0xff]  ;;  %s392_s27 = sand.u32 1, %s1852_s10  }
 0x15b   : > { %v1005_v13 = vmax.f32 %v1003_v10, 1e-10  ;;  %s1563_s28 = sshll.u32 %s392_s27, 4  ;;  %s2083_s23 = scalar_lea.sflag [#allocation3], %s392_s27 }
 0x15c   : > { %s394_s29 = scalar_lea.vmem [#allocation2], %s1563_s28  ;;  %s1796_s28 = scalar_lea.vmem %s1795_s26, 512 }
 0x15d   : > { %1786 = vrcp.f32 %v1005_v13  ;;  %s1444_s15 = sshll.u32 %s394_s29, 4  ;;  %s2076_s15 = int_to_ptr.vmem [resolvable:$true] %s1444_s15 }
 0x15e   : > { %s1790_s12 = scalar_lea.vmem %s2076_s15, 256  ;;  %p1797_p1 = scmp.lt.s32.totalorder %s2076_s15, %s1795_s26 }
 0x15f   : > { %p1791_p12 = scmp.ne.s32.totalorder %s2076_s15, %s1790_s12  ;;  %p1798_p2 = scmp.lt.s32.totalorder %s1796_s28, %s1790_s12 }
 0x161   : > { %p1792_p13 = pnand %p1791_p12, %p1967_p4  ;;  %p1799_p3 = por %p1798_p2, %p1797_p1 }
 0x163   : > { %p1793_p0 = pneg %p1792_p13 }
 0x165   : > { %p1800_p5 = pnand %p1799_p3, %p1793_p0 }
 0x167   : > { %v1787_v14 = vpop.eup %1786 }
 0x168   : > { %v1011_v17 = vmul.f32 %v1787_v14, %v1573_v15  ;;  %v1012_v18 = vmul.f32 %v1787_v14, %v1574_v16  ;;  %v1015_v19 = vadd.f32 %v1787_v14, %v987_v8 }
 0x16a   : > { %v1013_v20 = vadd.f32 %v1011_v17, %v985_v11  ;;  %v1014_v21 = vadd.f32 %v1012_v18, %v986_v12  ;;  %1788 = vrcp.f32 %v1015_v19 }
 0x174   : > { %v1789_v23 = vpop.eup %1788 }
 0x175   : > { %v1018_v24 = vmul.f32 %v1789_v23, %v1013_v20  ;;  %v1019_v25 = vmul.f32 %v1789_v23, %v1014_v21 }
 0x177   : > { %v1695_v26 = vpack.c.bf16 %v1019_v25, %v1018_v24 }
 0x179   : > { %1696 = vmatpush3.bf16.msra.mxu1 %v1695_v26 }
 0x17a   : > { %1667 = vmatprep.subr.mxu1 %v421_v27 }
 0x17c   : > { %1665 = vmatmul.mubr.msk.f32.vlgmr.msra.gmra.mrb[0].mxu1 %vm1020_vm5, %v422_v22 }
 0x17d   : > { %1668 = vmatpush3.msra.mxu1 %v421_v27  ;;  %1669 = vmatprep.mubr.msk.f32.mxu1 %vm1106_vm6, %v1098_v28 }
 0x180   : > { %1670 = vmatmul.mubr.msk.f32.vlgmr.msra.gmra.mrb[2].mxu1 %vm1106_vm6, %v1099_v29 }
 0x181   : > { %1672 = vmatprep.mubr.msk.f32.mxu1 %vm1106_vm6, %v1100_v30 }
 0x184   : > { %1673 = vmatmul.mubr.msk.f32.gmra.mrb[4].mxu1 %vm1106_vm6, %v1101_v31 }
 0x185   : > { %1677 = vmatprep.mubr.msk.f32.mxu1 %vm1106_vm6, %v1094_v32 }
 0x1b1   : > { %v1314_v47 = vpop.permute.xlu1 %1313 }
 0x1b5   : > { %v1319_v55 = vpop.permute.xlu1 %1318 }
 0x1b9   : > { %v1341_v1 = vpop.permute.xlu1 %1340 }
 0x1bc   : > { %v1304_v46 = vpop.permute.xlu0 %1303 }
 0x1c0   : > { %v1309_v48 = vpop.permute.xlu0 %1308 }
 0x1c4   : > { %v1336_v3 = vpop.permute.xlu0 %1335 }
 0x24f   : > { %v1090_v40 = vpop.f32.mrb[0].mxu1 }
 0x250   : > { %v1666_v42 = vpop.f32.mrb[1].mxu1  ;;  %1675 = vmatprep.subr.mxu1 %v1090_v40 }
 0x251   : > { %1676 = vmatpush3.msra.mxu1 %v1090_v40 }
 0x252   : > { %1678 = vmatmul.mubr.msk.f32.vlgmr.msra.gmra.mrb[2].mxu1 %vm1106_vm6, %v1095_v41 }
 0x253   : > { %1680 = vmatprep.mubr.msk.f32.mxu1 %vm1106_vm6, %v1096_v43 }
 0x256   : > { %1681 = vmatmul.mubr.msk.f32.gmra.mrb[4].mxu1 %vm1106_vm6, %v1097_v44 }
 0x257   : > { %1691 = vmatprep.mubr.msk.f32.mxu1 %vm1343_vm7, %v1329_v45 }
 0x325   : > { %v1679_v49 = vpop.f32.mrb[2].mxu1 }
 0x326   : > { %v1322_v50 = vadd.f32 %v1679_v49, %v1309_v48  ;;  %v1282_v51 = vpop.f32.mrb[3].mxu1 }
 0x327   : > { %v1321_v52 = vadd.f32 %v1304_v46, %v1282_v51 }
 0x328   : > { %v1326_v53 = vmax.f32 %v1322_v50, 0.0 }
 0x329   : > { %v1325_v54 = vmax.f32 %v1321_v52, 0.0  ;;  %v1682_v56 = vpop.f32.mrb[4].mxu1 }
 0x32a   : > { %v1324_v57 = vadd.f32 %v1682_v56, %v1319_v55  ;;  %v1292_v58 = vpop.f32.mrb[5].mxu1 }
 0x32b   : > { %v1697_v59 = vpack.c.bf16 %v1326_v53, %v1325_v54  ;;  %v1323_v60 = vadd.f32 %v1314_v47, %v1292_v58 }
 0x32c   : > { %v1328_v61 = vmax.f32 %v1324_v57, 0.0 }
 0x32d   : > { %v1327_v62 = vmax.f32 %v1323_v60, 0.0  ;;  %1698 = vmatprep.subr.bf16.mxu1 %v1697_v59 }
 0x32e   : > { %1700 = vmatpush3.bf16.msra.mxu1 %v1697_v59 }
 0x32f   : > { %v1701_v63 = vpack.c.bf16 %v1328_v61, %v1327_v62 }
 0x331   : > { %1702 = vmatprep.subr.bf16.mxu1 %v1701_v63 }
 0x332   : > { %1704 = vmatpush3.bf16.msra.mxu1 %v1701_v63 }
 0x335   : > { %1692 = vmatmul.mubr.msk.f32.vlgmr.msra.gmra.mrb[6].mxu1 %vm1343_vm7, %v1330_v0 }
 0x408   : > { %v1693_v2 = vpop.f32.mrb[6].mxu1 }
 0x409   : > { %v1422_v4 = vadd.f32 %v1693_v2, %v1341_v1  ;;  %v1416_v5 = vpop.f32.mrb[7].mxu1 }
 0x40a   : > { %v1417_v6 = vadd.f32 %v1416_v5, %v1336_v3 }
 0x40b   : > { %v1426_v7 = vmax.f32 %v1422_v4, 0.0 }
 0x40c   : > { %v1425_v8 = vmax.f32 %v1417_v6, 0.0 }
 0x40d   : > { %1428 = vst [vmem:[%s394_s29 + $0x8] sm:$0xff] %v1426_v7 }
 0x40e   : > { %1427 = vst [vmem:[%s394_s29] sm:$0xff] %v1425_v8 }
 0x40f   : > { %1803 = shalt.err (!%p1800_p5)
}
 0x410   : > { %s1804_s27 = scalar_lea.hbm %s2081_s20, 256  ;;  %s1808_s24 = scalar_lea.hbm %s2138_s9, 512 }
 0x411   : > { %p1805_p6 = scmp.ne.s32.totalorder %s2081_s20, %s1804_s27  ;;  %p1809_p10 = scmp.lt.u32.totalorder %s2081_s20, %s2138_s9 }
 0x412   : > { %p1810_p11 = scmp.lt.u32.totalorder %s1808_s24, %s1804_s27  ;;  %p1812_p13 = scmp.lt.u32.totalorder %s1804_s27, %s2081_s20 }
 0x413   : > { %p1806_p7 = pnand %p1805_p6, %p1967_p4 }
 0x414   : > { %p1811_p12 = por %p1810_p11, %p1809_p10 }
 0x415   : > { %p1807_p9 = pneg %p1806_p7 }
 0x416   : > { %p1813_p0 = por %p1812_p13, %p1811_p12 }
 0x418   : > { %p1814_p1 = pnand %p1813_p0, %p1807_p9 }
 0x41a   : > { %1817 = shalt.err (!%p1814_p1)
}
 0x41b   : > { %s1875_s12 = smov 128   ;;  %s1876_s26 = smov 8  }
 0x41c   : > { %1719 = dma.vmem_to_hbm [thread:$0]  (%p1967_p4), %s2076_s15, 256, %s2081_s20, %s2083_s23, %s1875_s12, %s1875_s12, %s1876_s26  }
 0x41d PF: > { %p1725_p2 = scmp.ge.s32.totalorder %s1868_s14, 2  ;;  %s1459_s28 = sand.u32 1, %s1848_s30  }
 0x41e   : > { %s1460_s27 = scalar_lea.sflag [#allocation3], %s1459_s28 }
 0x41f   : > { %p1722_p3 = pnand %p1725_p2, %p1974_p8 }
 0x421   : > { %1843 = dma.done.wait (!%p1722_p3), %s1460_s27, 256  }
 0x422   : > { %1845 = vsyncadd (!%p1722_p3), %s1460_s27, 4294967040  ;;  %s22_s14 = sadd.s32 1, %s1868_s14   ;;  %s2141_s30 = smov %s1852_s10 }
 0x423   : > { %p19_p5 = scmp.ge.s32.totalorder %s22_s14, 4   ;;  %s2142_s10 = smov %s1856_s11 }
 0x424   : > { %s2143_s11 = smov %s1980_s22  ;;  %s2144_s12 = smov %s1864_s13 }
 0x425   : > { %s2145_s13 = smov %s2147_s17  ;;  %21 = sbr.rel (!%p19_p5) target bundleno = 4 (0x4), region = 100 }
 0x42c   :  { %1465 = vsyncpa [#allocation3], 1 }
 0x42d   :  { %1467 = vsyncpa [#allocation3 + $0x1], 1 }

</bundles_post_ra>
